<compile_context>
chip_gen: v5e
topology: v5e:2x2
jax: 0.10.0
libtpu: 0.0.40
codegen_flags: <defaults>
</compile_context>

<pallas_src>
import functools

import jax
import jax.numpy as jnp
from jax import lax
from jax.experimental import pallas as pl
from jax.experimental.pallas import tpu as pltpu


# ---------------------------------------------------------------------------
# Kernels
# ---------------------------------------------------------------------------

def _pow_p(x, p, int_p):
    if int_p is not None:
        # Integer exponent: a couple of VPU multiplies per element.
        return lax.integer_pow(x, int_p)
    # Non-integer p: exp/log on the EUP (x is already clamped to >= eps > 0).
    return jnp.exp(p * jnp.log(x))


def _gem_kernel_single(x_ref, o_ref, *, p, int_p, eps, hw):
    """Whole spatial extent in one block: no scratch, no reduction axis."""
    x = x_ref[...].astype(jnp.float32)
    x = jnp.maximum(x, eps)                       # clamp(min=eps)
    xp = _pow_p(x, p, int_p)
    m = jnp.sum(xp, axis=-1, keepdims=True) * (1.0 / hw)
    o_ref[...] = (m ** (1.0 / p)).astype(o_ref.dtype)


def _gem_kernel_chunked(x_ref, o_ref, acc_ref, *, p, int_p, eps, hw, ts,
                        needs_mask):
    """Very large H*W: spatial axis split into 128-aligned chunks (last grid
    axis, 'arbitrary') with a (TM, 1) f32 accumulator."""
    k = pl.program_id(1)

    @pl.when(k == 0)
    def _init():
        acc_ref[...] = jnp.zeros_like(acc_ref)

    x = x_ref[...].astype(jnp.float32)
    x = jnp.maximum(x, eps)
    xp = _pow_p(x, p, int_p)

    last = pl.num_programs(1) - 1
    if needs_mask:
        # Mask only on the ragged last chunk; all other chunks take the
        # unmasked (cheaper) path.
        @pl.when(k < last)
        def _full():
            acc_ref[...] += jnp.sum(xp, axis=-1, keepdims=True)

        @pl.when(k == last)
        def _tail():
            lane = lax.broadcasted_iota(jnp.int32, xp.shape, dimension=1)
            valid = hw - k * ts
            acc_ref[...] += jnp.sum(jnp.where(lane < valid, xp, 0.0),
                                    axis=-1, keepdims=True)
    else:
        acc_ref[...] += jnp.sum(xp, axis=-1, keepdims=True)

    @pl.when(k == last)
    def _finalize():
        m = acc_ref[...] * (1.0 / hw)             # mean over the full window
        o_ref[...] = (m ** (1.0 / p)).astype(o_ref.dtype)


# ---------------------------------------------------------------------------
# Tile selection
# ---------------------------------------------------------------------------

# Total in-flight VMEM footprint target.  Portable: stays under v5e's 16 MiB
# scoped default and well under v6e/v7x's 32 MiB scoped defaults, so no
# vmem_limit_bytes override is required on any generation.
_TOTAL_VMEM_BUDGET = 12 * 1024 * 1024
# A (TM, 1) column buffer pads to 128 lanes -> ~512 B of VMEM per row (f32).
_COL_BUF_BYTES = 512
_TM_CAP = 8192


def _round_up(a, m):
    return -(-a // m) * m


def _choose_tiles(num_rows, hw, itemsize):
    """Pick (TM, TS) against the total VMEM budget, counting padded columns."""
    row_mult = 8 if itemsize >= 4 else (16 if itemsize == 2 else 32)

    # Single-chunk case footprint per row: 2 input buffers + 2 padded output
    # buffers (double-buffered BlockSpec pipeline).
    per_row_single = 2 * hw * itemsize + 2 * _COL_BUF_BYTES

    if per_row_single * row_mult <= _TOTAL_VMEM_BUDGET:
        # Common case: whole spatial extent per block (full-extent last dim is
        # always legal, even when H*W % 128 != 0).
        ts = hw
        tm = _TOTAL_VMEM_BUDGET // per_row_single
        tm = max(row_mult, (tm // row_mult) * row_mult)
        tm = min(tm, _TM_CAP)
        if num_rows > row_mult:
            # Keep >= 2 row blocks so the 'parallel' axis can shard across the
            # two v7x TensorCores and the pipeline has something to overlap.
            half = _round_up(-(-num_rows // 2), row_mult)
            tm = min(tm, half)
        if tm >= num_rows:
            tm = num_rows        # full-extent block: no divisibility constraint
    else:
        # Very large H*W (high-res feature maps): split the spatial axis into
        # 128-aligned chunks and accumulate across the last grid axis.
        # Footprint: 2*tm*ts*itemsize inputs + 2 padded outputs + 1 scratch.
        tm = row_mult if num_rows >= row_mult else num_rows
        avail = _TOTAL_VMEM_BUDGET - 3 * tm * _COL_BUF_BYTES
        ts = max(128, (avail // (2 * tm * itemsize)) // 128 * 128)
        ts = min(ts, _round_up(hw, 128))
    return tm, ts


# ---------------------------------------------------------------------------
# Wrapper
# ---------------------------------------------------------------------------

def gem_pallas(x, p=3.0, eps=1e-6, *, _force_tiles=None):
    """GeM pooling. x: (B, C, H, W) -> (B, C, 1, 1)."""
    B, C, H, W = x.shape
    num_rows = B * C
    hw = H * W
    x2d = x.reshape(num_rows, hw)
    # TODO(synk): a channels-last (B*H*W, C) layout would give lane-dense
    # outputs, but an explicit NCHW->NHWC transpose adds a full HBM pass, so
    # the column-shaped output is kept and its padded VMEM cost is budgeted.

    if _force_tiles is not None:
        tm, ts = _force_tiles
    else:
        tm, ts = _choose_tiles(num_rows, hw, x.dtype.itemsize)

    p = float(p)
    eps = float(eps)
    int_p = int(p) if p.is_integer() else None

    n_elems = num_rows * hw
    cost = pl.CostEstimate(
        flops=6 * n_elems,
        transcendentals=(num_rows if int_p is not None
                         else 2 * n_elems + num_rows),
        bytes_accessed=n_elems * x.dtype.itemsize + num_rows * x.dtype.itemsize,
    )

    grid_rows = pl.cdiv(num_rows, tm)

    if ts >= hw:
        # Single spatial chunk: no accumulator scratch, 1-D grid.
        kernel = functools.partial(_gem_kernel_single, p=p, int_p=int_p,
                                   eps=eps, hw=hw)
        out2d = pl.pallas_call(
            kernel,
            out_shape=jax.ShapeDtypeStruct((num_rows, 1), x.dtype),
            grid=(grid_rows,),
            in_specs=[pl.BlockSpec((tm, hw), lambda i: (i, 0))],
            out_specs=pl.BlockSpec((tm, 1), lambda i: (i, 0)),
            compiler_params=pltpu.CompilerParams(
                dimension_semantics=("parallel",)),
            cost_estimate=cost,
        )(x2d)
    else:
        needs_mask = (hw % ts) != 0
        kernel = functools.partial(_gem_kernel_chunked, p=p, int_p=int_p,
                                   eps=eps, hw=hw, ts=ts, needs_mask=needs_mask)
        out2d = pl.pallas_call(
            kernel,
            out_shape=jax.ShapeDtypeStruct((num_rows, 1), x.dtype),
            grid=(grid_rows, pl.cdiv(hw, ts)),
            in_specs=[pl.BlockSpec((tm, ts), lambda i, k: (i, k))],
            out_specs=pl.BlockSpec((tm, 1), lambda i, k: (i, 0)),
            scratch_shapes=[pltpu.VMEM((tm, 1), jnp.float32)],
            compiler_params=pltpu.CompilerParams(
                dimension_semantics=("parallel", "arbitrary")),
            cost_estimate=cost,
        )(x2d)

    return out2d.reshape(B, C, 1, 1)


class GeM:
    """JAX/Pallas mirror of the PyTorch GeM module (p_trainable=False default)."""

    def __init__(self, p=3, eps=1e-6, p_trainable=False):
        # p is baked into the kernel as a static constant.
        # TODO(synk): trainable p would need to be passed as a scalar operand
        # (and differentiated through a pure-JAX path); not wired up here.
        self.p = float(p)
        self.eps = float(eps)

    def __call__(self, x):
        return gem_pallas(x, p=self.p, eps=self.eps)


def _gem_ref(x, p=3.0, eps=1e-6):
    # Pure-JAX reference matching F.avg_pool2d(x.clamp(eps).pow(p), HW).pow(1/p)
    xc = jnp.maximum(x, eps) ** p
    m = jnp.mean(xc, axis=(2, 3), keepdims=True)
    return m ** (1.0 / p)


if __name__ == "__main__":
    # Primary test shape (matches the module spec's small example).
    key = jax.random.PRNGKey(0)
    B, C, H, W = 2, 4, 16, 16
    x = jax.random.normal(key, (B, C, H, W), dtype=jnp.float32)

    layer = GeM(p=3, eps=1e-6, p_trainable=False)
    out = jax.block_until_ready(layer(x))
    ref = _gem_ref(x, p=3.0, eps=1e-6)
    assert out.shape == (B, C, 1, 1), out.shape
    assert jnp.allclose(out, ref, atol=1e-5, rtol=1e-5), "mismatch vs reference"

    # Row tiling with >=2 row blocks and a non-128-multiple spatial extent
    # (typical 7x7 backbone feature map).
    x2 = jax.random.normal(jax.random.PRNGKey(1), (8, 132, 7, 7), jnp.float32)
    out2 = jax.block_until_ready(gem_pallas(x2, p=3.0, eps=1e-6))
    ref2 = _gem_ref(x2, p=3.0, eps=1e-6)
    assert jnp.allclose(out2, ref2, atol=1e-5, rtol=1e-5), "tiled mismatch"

    # bf16 input: kernel accumulates in f32, output cast back to bf16.
    x3 = jax.random.normal(jax.random.PRNGKey(2), (2, 16, 14, 14), jnp.bfloat16)
    out3 = jax.block_until_ready(gem_pallas(x3, p=3.0, eps=1e-6))
    ref3 = _gem_ref(x3.astype(jnp.float32), p=3.0, eps=1e-6)
    assert jnp.allclose(out3.astype(jnp.float32), ref3, atol=2e-2, rtol=2e-2), \
        "bf16 mismatch"

    # Exercise the chunked-reduction path (forced small tiles: grid (2, 3),
    # ragged last spatial chunk masked only on the tail).
    x4 = jax.random.normal(jax.random.PRNGKey(3), (2, 8, 16, 20), jnp.float32)
    out4 = jax.block_until_ready(
        gem_pallas(x4, p=3.0, eps=1e-6, _force_tiles=(8, 128)))
    ref4 = _gem_ref(x4, p=3.0, eps=1e-6)
    assert jnp.allclose(out4, ref4, atol=1e-5, rtol=1e-5), "chunked mismatch"

    print("KERNEL_OK")
</pallas_src>

<mosaic_0001>
module attributes {stable_mosaic.version = 11 : i64} {
  func.func @_gem_kernel_single(%arg0: i32, %arg1: memref<8x256xf32, #tpu.memory_space<vmem>>, %arg2: memref<8x1xf32, #tpu.memory_space<vmem>>) attributes {dimension_semantics = [#tpu.dimension_semantics<parallel>], iteration_bounds = array<i64: 1>, scalar_prefetch = 0 : i64, scratch_operands = 0 : i64, tpu.core_type = #tpu.core_type<tc>, window_params = [{transform_indices = @transform_0, window_bounds = array<i64: 8, 256>}, {transform_indices = @transform_1, window_bounds = array<i64: 8, 1>}]} {
    %c0 = arith.constant 0 : index
    %c0_0 = arith.constant 0 : index
    %0 = vector.load %arg1[%c0, %c0_0] : memref<8x256xf32, #tpu.memory_space<vmem>>, vector<8x256xf32>
    %cst = arith.constant 9.99999997E-7 : f32
    %1 = vector.broadcast %cst : f32 to vector<8x256xf32>
    %2 = arith.maximumf %0, %1 : vector<8x256xf32>
    %3 = arith.mulf %2, %2 : vector<8x256xf32>
    %4 = arith.mulf %2, %3 : vector<8x256xf32>
    %cst_1 = arith.constant dense<0.000000e+00> : vector<8xf32>
    %5 = vector.multi_reduction <add>, %4, %cst_1 [1] : vector<8x256xf32> to vector<8xf32>
    %6 = vector.shape_cast %5 : vector<8xf32> to vector<8x1xf32>
    %cst_2 = arith.constant 3.906250e-03 : f32
    %7 = vector.broadcast %cst_2 : f32 to vector<8x1xf32>
    %8 = arith.mulf %6, %7 : vector<8x1xf32>
    %cst_3 = arith.constant 0.333333343 : f32
    %9 = vector.broadcast %cst_3 : f32 to vector<8x1xf32>
    %10 = math.powf %8, %9 : vector<8x1xf32>
    %c0_4 = arith.constant 0 : index
    %c0_5 = arith.constant 0 : index
    %11 = vector.load %arg2[%c0_4, %c0_5] : memref<8x1xf32, #tpu.memory_space<vmem>>, vector<8x1xf32>
    tpu.vector_store %arg2[%c0_4, %c0_5], %10 {strides = array<i32>} : memref<8x1xf32, #tpu.memory_space<vmem>>, vector<8x1xf32>,
    return
  }
  func.func @transform_0(%arg0: i32) -> (i32, i32) {
    %c0_i32 = arith.constant 0 : i32
    %c0_i32_0 = arith.constant 0 : i32
    return %arg0, %c0_i32 : i32, i32
  }
  func.func @transform_1(%arg0: i32) -> (i32, i32) {
    %c0_i32 = arith.constant 0 : i32
    %c0_i32_0 = arith.constant 0 : i32
    return %arg0, %c0_i32 : i32, i32
  }
}

</mosaic_0001>

<bundles_post_ra>
// kernel: tpu_custom_call.1
= control target key start
LH: loop header
LB: loop body
LE: loop exit
PB: predicated region body
PF: predicated region fallthrough
CT: control target
= control target key end

     0   :  { %6 = vsyncpa [#allocation3], 0  ;;  %s97_s9 = smov [#allocation2]   ;;  %s114_s0 = inlined_call_operand.hbm [shape: f32[8,256], index: 0, kind: input, shape index: {}]   ;;  %s115_s1 = inlined_call_operand.vmem [shape: f32[8,1], index: 1, kind: output, shape index: {}]  }
   0x1   :  { %s12_s8 = sshll.u32 %s114_s0, 4  ;;  %s14_s10 = sshll.u32 %s97_s9, 4  ;;  %s13_s8 = int_to_ptr.hbm [resolvable:$true] %s12_s8  ;;  %s15_s10 = int_to_ptr.vmem [resolvable:$true] %s14_s10 }
   0x2   :  { %17 = dma.hbm_to_vmem [thread:$0]  %s13_s8, 256, %s15_s10, [#allocation3]  }
   0x3   :  { %95 = dma.done.wait [#allocation3], 256  }
   0x4   :  { %96 = vsyncadd [#allocation3], 4294967040  ;;  %v22_v0 = vld [vmem:[#allocation2] sm:$0xff]  ;;  %v23_v1 = vld [vmem:[#allocation2 + $0x8] sm:$0xff]  ;;  %vm35_vm4 = vcmask 7168  }
   0x5   :  { %v24_v2 = vmax.f32 %v22_v0, 1e-06  ;;  %v25_v3 = vmax.f32 %v23_v1, 1e-06 }
   0x7   :  { %v26_v4 = vmul.f32 %v24_v2, %v24_v2  ;;  %v27_v5 = vmul.f32 %v25_v3, %v25_v3 }
   0x9   :  { %v28_v6 = vmul.f32 %v26_v4, %v24_v2  ;;  %v29_v7 = vmul.f32 %v27_v5, %v25_v3 }
   0xb   :  { %v30_v8 = vadd.f32 %v29_v7, %v28_v6 }
   0xd   :  { %31 = vadd.xlane.f32.xlu0 %v30_v8 }
  0x80   :  { %v32_v9 = vpop.xlane.xlu0 %31 }
  0x81   :  { %v33_v10 = vmul.f32 0.00390625, %v32_v9 }
  0x83   :  { %v44_v11 = vand.u32 2147483647, %v33_v10  ;;  %v61_v23 = vand.u32 2147483648, %v33_v10  ;;  %vm43_vm2 = vcmp.lt.f32.partialorder %v33_v10, 0.0  ;;  %vm42_vm3 = vcmp.eq.f32.partialorder %v33_v10, 0.0 }
  0x85   :  { %67 = vlog2.f32 %v44_v11  ;;  %vm58_vm0 = vweird.f32 %v44_v11  ;;  %vm60_vm1 = vcmp.eq.f32.partialorder %v44_v11, 0.0  ;;  %vm45_vm5 = vcmp.eq.f32.partialorder %v44_v11, inf }
  0x8b   :  { %v68_v12 = vpop.eup %67 }
  0x8c   :  { %v48_v13 = vmul.f32 -0.33333334, %v68_v12 }
  0x8e   :  { %69 = vpow2.f32 %v48_v13 }
  0x94   :  { %v70_v14 = vpop.eup %69 }
  0x95   :  { %v50_v15 = vmul.f32 %v70_v14, %v70_v14 }
  0x97   :  { %v51_v16 = vmul.f32 %v50_v15, %v44_v11 }
  0x99   :  { %v52_v17 = vmul.f32 %v51_v16, %v50_v15 }
  0x9b   :  { %v53_v18 = vsub.f32 %v52_v17, %v70_v14 }
  0x9d   :  { %v54_v19 = vmul.f32 -0.33333334, %v53_v18 }
  0x9f   :  { %v55_v20 = vadd.f32 %v70_v14, %v54_v19 }
  0xa1   :  { %v56_v21 = vmul.f32 %v55_v20, %v33_v10 }
  0xa3   :  { %v57_v22 = vmul.f32 %v56_v21, %v55_v20 }
  0xa5   :  { %v59_v24 = vsel %vm58_vm0, %v33_v10, %v57_v22 }
  0xa6   :  { %v62_v25 = vsel %vm60_vm1, %v61_v23, %v59_v24 }
  0xa7   :  { %v63_v26 = vsel %vm43_vm2, nan, %v62_v25 }
  0xa8   :  { %v64_v27 = vsel %vm42_vm3, 0.0, %v63_v26 }
  0xa9   :  { %v65_v28 = vsel %vm45_vm5, inf, %v64_v27 }
  0xaa   :  { %36 = vst.msk [vmem:[%s115_s1] sm:$0xff] %vm35_vm4, %v65_v28 }
  0xab   :  { %41 = vsyncpa [#allocation3], 1 }

</bundles_post_ra>
